<compile_context>
chip_gen: v5e
topology: v5e:2x2
jax: 0.10.0
libtpu: 0.0.40
codegen_flags: <defaults>
</compile_context>

<pallas_src>
import functools

import numpy as np
import jax
import jax.numpy as jnp
from jax.experimental import pallas as pl
from jax.experimental.pallas import tpu as pltpu


def _round_up(x, m):
    return ((x + m - 1) // m) * m


def _proto_kernel(supp_t_ref, protot_ref):
    """Class prototypes, produced already transposed for the MXU feed.

    supp_t_ref : (S, Dp, Cp)  support samples with the class axis last (lanes)
    protot_ref : (Dp, Cp)     prototypes^T = mean over the support axis
    """
    protot_ref[...] = jnp.mean(supp_t_ref[...], axis=0)


def _dist_kernel(protot_ref, q_ref, dist_ref, *, matmul_dtype):
    """Squared euclidean distances via the Gram decomposition.

    dist[i, j] = ||q_i||^2 + ||p_j||^2 - 2 * q_i . p_j
    The dominant 2*TQ*Cp*Dp flops run on the MXU; the norms are tiny VPU/XLU
    work.  Accumulation is always f32 via preferred_element_type.
    """
    q = q_ref[...]                                     # (TQ, Dp) f32
    pt = protot_ref[...]                               # (Dp, Cp) f32
    q_sq = jnp.sum(q * q, axis=-1, keepdims=True)      # (TQ, 1)
    p_sq = jnp.sum(pt * pt, axis=0, keepdims=True)     # (1, Cp)
    cross = jnp.dot(q.astype(matmul_dtype), pt.astype(matmul_dtype),
                    preferred_element_type=jnp.float32)  # (TQ, Cp) on MXU
    # Cancellation can produce tiny negatives; clamp to keep distances >= 0.
    dist_ref[...] = jnp.maximum(q_sq + p_sq - 2.0 * cross, 0.0)


def proto_dists_pallas(support_samples, query_samples, *,
                       matmul_dtype=jnp.float32, tq=256):
    """support_samples: (C, S, D); query_samples: (Nq, D) -> dists (Nq, C)."""
    support_samples = jnp.asarray(support_samples, jnp.float32)
    query_samples = jnp.asarray(query_samples, jnp.float32)
    C, S, D = support_samples.shape
    Nq, Dq = query_samples.shape
    if Dq != D:
        raise Exception("feature dims of query and support must match")

    # Lane/sublane-aligned padding (zero padding does not change the result;
    # padded classes / rows are sliced off at the end).
    Dp = _round_up(D, 128)
    Cp = _round_up(C, 128)
    TQ = min(tq, _round_up(max(Nq, 1), 8))
    Nqp = _round_up(Nq, TQ)

    supp = jnp.pad(support_samples, ((0, Cp - C), (0, 0), (0, Dp - D)))
    supp_t = jnp.transpose(supp, (1, 2, 0))            # (S, Dp, Cp)
    q = jnp.pad(query_samples, ((0, Nqp - Nq), (0, Dp - D)))

    # Stage 1: prototypes (tiny, single shot), emitted as (Dp, Cp) so the
    # distance kernel feeds the MXU without any per-tile transpose.
    protos_t = pl.pallas_call(
        _proto_kernel,
        out_shape=jax.ShapeDtypeStruct((Dp, Cp), jnp.float32),
        grid=(1,),
        in_specs=[pl.BlockSpec((S, Dp, Cp), lambda i: (0, 0, 0))],
        out_specs=pl.BlockSpec((Dp, Cp), lambda i: (0, 0)),
        compiler_params=pltpu.CompilerParams(
            dimension_semantics=("arbitrary",)),
    )(supp_t)

    # Stage 2: tiled over the query axis ("parallel" -> pipelining + megacore
    # sharding on v7x); prototypes^T stay fully resident across tiles.
    n_tiles = Nqp // TQ
    flops = 2 * Nqp * Cp * Dp + 3 * Nqp * Dp + 3 * Dp * Cp
    bytes_accessed = 4 * (Nqp * Dp + Dp * Cp + Nqp * Cp)
    vmem_need = 4 * (2 * TQ * Dp + 2 * TQ * Cp + 2 * Dp * Cp)
    vmem_limit = int(min(max(2 * vmem_need, 16 * 1024 * 1024),
                         64 * 1024 * 1024))

    dists_padded = pl.pallas_call(
        functools.partial(_dist_kernel, matmul_dtype=matmul_dtype),
        out_shape=jax.ShapeDtypeStruct((Nqp, Cp), jnp.float32),
        grid=(n_tiles,),
        in_specs=[
            pl.BlockSpec((Dp, Cp), lambda i: (0, 0)),   # protos^T, resident
            pl.BlockSpec((TQ, Dp), lambda i: (i, 0)),   # query tile
        ],
        out_specs=pl.BlockSpec((TQ, Cp), lambda i: (i, 0)),
        compiler_params=pltpu.CompilerParams(
            dimension_semantics=("parallel",),
            vmem_limit_bytes=vmem_limit),
        cost_estimate=pl.CostEstimate(
            flops=flops, transcendentals=0, bytes_accessed=bytes_accessed),
    )(protos_t, q)

    return dists_padded[:Nq, :C]


def protonet_forward(x, y, n_classes, n_support=None, n_query=None, flag=0,
                     matmul_dtype=jnp.float32):
    """Mirrors ProtoNet.forward (features are [N, D])."""
    # TODO(synk): torch.unique / .nonzero() per-class index selection is
    # data-dependent (dynamic shapes); the indices are computed host-side, but
    # the row gathers (jnp.take) and all distance math run on device.
    if flag == 0:
        y_np = np.asarray(y)
        classes = np.unique(y_np)
        support_idx = np.concatenate(
            [np.nonzero(y_np == c)[0][:n_support] for c in classes])
        query_idx = np.concatenate(
            [np.nonzero(y_np == c)[0][n_support:] for c in classes])
        x_dev = jnp.asarray(x, jnp.float32)
        support_samples = jnp.take(
            x_dev, jnp.asarray(support_idx, jnp.int32), axis=0
        ).reshape(n_classes, n_support, -1)
        query_samples = jnp.take(
            x_dev, jnp.asarray(query_idx, jnp.int32), axis=0)
    else:
        data_src = jnp.asarray(x[0], jnp.float32)
        data_tgt = jnp.asarray(x[1], jnp.float32)
        label_src, label_tgt = np.asarray(y[0]), np.asarray(y[1])
        classes = np.unique(label_src)
        support_idx = np.concatenate(
            [np.nonzero(label_src == c)[0][:n_support] for c in classes])
        query_idx = np.concatenate(
            [np.nonzero(label_tgt == c)[0][:n_query] for c in classes])
        support_samples = jnp.take(
            data_src, jnp.asarray(support_idx, jnp.int32), axis=0
        ).reshape(n_classes, n_support, -1)
        query_samples = jnp.take(
            data_tgt, jnp.asarray(query_idx, jnp.int32), axis=0)
    return proto_dists_pallas(support_samples, query_samples,
                              matmul_dtype=matmul_dtype)


def _reference_dists(support_samples, query_samples):
    protos = support_samples.mean(axis=1)
    diff = query_samples[:, None, :] - protos[None, :, :]
    return (diff ** 2).sum(axis=-1)


if __name__ == "__main__":
    key = jax.random.PRNGKey(0)

    n_classes = 4
    n_support = 2
    n_query = 3
    per_class = n_support + n_query
    N = n_classes * per_class              # 20 samples
    D = 32                                 # feature dim

    kx, kt = jax.random.split(key)
    x = jax.random.normal(kx, (N, D), dtype=jnp.float32)
    y = jnp.repeat(jnp.arange(n_classes, dtype=jnp.int32), per_class)

    # Host-side reference indices (balanced episode).
    x_np, y_np = np.asarray(x), np.asarray(y)
    classes = np.unique(y_np)
    supp_idx = np.concatenate(
        [np.nonzero(y_np == c)[0][:n_support] for c in classes])
    qry_idx = np.concatenate(
        [np.nonzero(y_np == c)[0][n_support:] for c in classes])
    ref = _reference_dists(
        x_np[supp_idx].reshape(n_classes, n_support, -1), x_np[qry_idx])

    # ---- flag == 0 path, f32 MXU operands ----
    dists = jax.block_until_ready(
        protonet_forward(x, y, n_classes, n_support=n_support, flag=0))
    np.testing.assert_allclose(np.asarray(dists), ref, rtol=1e-2, atol=1e-2)

    # ---- flag == 0 path, bf16 MXU operands (v6e/v7x fast path) ----
    dists_bf16 = jax.block_until_ready(
        protonet_forward(x, y, n_classes, n_support=n_support, flag=0,
                         matmul_dtype=jnp.bfloat16))
    np.testing.assert_allclose(np.asarray(dists_bf16), ref,
                               rtol=5e-2, atol=5e-1)

    # ---- flag != 0 path (source support / target query) ----
    x_tgt = jax.random.normal(kt, (N, D), dtype=jnp.float32)
    dists2 = jax.block_until_ready(
        protonet_forward((x, x_tgt), (y, y), n_classes,
                         n_support=n_support, n_query=n_query, flag=1))
    x_tgt_np = np.asarray(x_tgt)
    qry_idx2 = np.concatenate(
        [np.nonzero(y_np == c)[0][:n_query] for c in classes])
    ref2 = _reference_dists(
        x_np[supp_idx].reshape(n_classes, n_support, -1), x_tgt_np[qry_idx2])
    np.testing.assert_allclose(np.asarray(dists2), ref2, rtol=1e-2, atol=1e-2)

    print("KERNEL_OK")
</pallas_src>

<mosaic_0001>
module attributes {stable_mosaic.version = 11 : i64} {
  func.func @_proto_kernel(%arg0: i32, %arg1: memref<2x128x128xf32, #tpu.memory_space<vmem>>, %arg2: memref<128x128xf32, #tpu.memory_space<vmem>>) attributes {dimension_semantics = [#tpu.dimension_semantics<arbitrary>], iteration_bounds = array<i64: 1>, scalar_prefetch = 0 : i64, scratch_operands = 0 : i64, tpu.core_type = #tpu.core_type<tc>, window_params = [{pipeline_mode = #tpu.pipeline_mode<synchronous>, transform_indices = @transform_0, window_bounds = array<i64: 2, 128, 128>}, {pipeline_mode = #tpu.pipeline_mode<synchronous>, transform_indices = @transform_1, window_bounds = array<i64: 128, 128>}]} {
    %c0 = arith.constant 0 : index
    %c0_0 = arith.constant 0 : index
    %c0_1 = arith.constant 0 : index
    %0 = vector.load %arg1[%c0, %c0_0, %c0_1] : memref<2x128x128xf32, #tpu.memory_space<vmem>>, vector<2x128x128xf32>
    %cst = arith.constant dense<0.000000e+00> : vector<128x128xf32>
    %1 = vector.multi_reduction <add>, %0, %cst [0] : vector<2x128x128xf32> to vector<128x128xf32>
    %cst_2 = arith.constant 2.000000e+00 : f32
    %2 = vector.broadcast %cst_2 : f32 to vector<128x128xf32>
    %3 = arith.divf %1, %2 : vector<128x128xf32>
    %c0_3 = arith.constant 0 : index
    %c0_4 = arith.constant 0 : index
    %4 = vector.load %arg2[%c0_3, %c0_4] : memref<128x128xf32, #tpu.memory_space<vmem>>, vector<128x128xf32>
    tpu.vector_store %arg2[%c0_3, %c0_4], %3 {strides = array<i32>} : memref<128x128xf32, #tpu.memory_space<vmem>>, vector<128x128xf32>,
    return
  }
  func.func @transform_0(%arg0: i32) -> (i32, i32, i32) {
    %c0_i32 = arith.constant 0 : i32
    %c0_i32_0 = arith.constant 0 : i32
    %c0_i32_1 = arith.constant 0 : i32
    %c0_i32_2 = arith.constant 0 : i32
    return %c0_i32, %c0_i32_0, %c0_i32_1 : i32, i32, i32
  }
  func.func @transform_1(%arg0: i32) -> (i32, i32) {
    %c0_i32 = arith.constant 0 : i32
    %c0_i32_0 = arith.constant 0 : i32
    %c0_i32_1 = arith.constant 0 : i32
    return %c0_i32, %c0_i32_0 : i32, i32
  }
}

</mosaic_0001>

<bundles_post_ra>
// kernel: tpu_custom_call.1
= control target key start
LH: loop header
LB: loop body
LE: loop exit
PB: predicated region body
PF: predicated region fallthrough
CT: control target
= control target key end

     0   :  { %6 = vsyncpa [#allocation3], 0  ;;  %s217_s0 = inlined_call_operand.hbm [shape: f32[2,128,128], index: 0, kind: input, shape index: {}]   ;;  %s218_s1 = inlined_call_operand.hbm [shape: f32[128,128], index: 1, kind: output, shape index: {}]  }
   0x1   :  { %7 = vsyncpa [#allocation4], 0  ;;  %s12_s8 = sshll.u32 %s217_s0, 4  ;;  %s190_s9 = smov [#allocation2]   ;;  %s13_s8 = int_to_ptr.hbm [resolvable:$true] %s12_s8 }
   0x2   :  { %s14_s10 = sshll.u32 %s190_s9, 4  ;;  %s191_s11 = smov 128   ;;  %s15_s10 = int_to_ptr.vmem [resolvable:$true] %s14_s10 }
   0x3   :  { %s192_s12 = smov 8  }
   0x4   :  { %20 = dma.hbm_to_vmem [thread:$0]  %s13_s8, 4096, %s15_s10, [#allocation3], %s191_s11, %s191_s11, %s192_s12  }
   0x5   :  { %186 = dma.done.wait [#allocation3], 4096  }
   0x6   :  { %187 = vsyncadd [#allocation3], 4294963200  ;;  %v193_v0 = vmov 2.0   ;;  %v25_v3 = vld [vmem:[#allocation2] sm:$0xff]  ;;  %v26_v5 = vld [vmem:[#allocation2 + $0x8] sm:$0xff]  ;;  %s194_s0 = smov [#allocation5]  }
   0x7   :  { %136 = vrcp.f32 %v193_v0  ;;  %v41_v4 = vld [vmem:[#allocation2 + $0x80] sm:$0xff]  ;;  %v42_v7 = vld [vmem:[#allocation2 + $0x88] sm:$0xff]  ;;  %v27_v8 = vld [vmem:[#allocation2 + $0x10] sm:$0xff]  ;;  %s116_s13 = sshll.u32 %s194_s0, 4  ;;  %s118_s16 = sshll.u32 %s218_s1, 4  ;;  %s117_s13 = int_to_ptr.vmem [resolvable:$true] %s116_s13  ;;  %s119_s16 = int_to_ptr.hbm [resolvable:$true] %s118_s16 }
   0x8   :  { %v43_v9 = vld [vmem:[#allocation2 + $0x90] sm:$0xff]  ;;  %v28_v10 = vld [vmem:[#allocation2 + $0x18] sm:$0xff]  ;;  %v29_v13 = vld [vmem:[#allocation2 + $0x20] sm:$0xff]  ;;  %v57_v15 = vadd.f32 %v41_v4, %v25_v3  ;;  %v58_v16 = vadd.f32 %v42_v7, %v26_v5 }
   0x9   :  { %v44_v11 = vld [vmem:[#allocation2 + $0x98] sm:$0xff]  ;;  %v45_v14 = vld [vmem:[#allocation2 + $0xa0] sm:$0xff]  ;;  %v59_v17 = vadd.f32 %v43_v9, %v27_v8  ;;  %v30_v18 = vld [vmem:[#allocation2 + $0x28] sm:$0xff] }
   0xa   :  { %v46_v19 = vld [vmem:[#allocation2 + $0xa8] sm:$0xff]  ;;  %v60_v21 = vadd.f32 %v44_v11, %v28_v10  ;;  %v31_v22 = vld [vmem:[#allocation2 + $0x30] sm:$0xff]  ;;  %v61_v24 = vadd.f32 %v45_v14, %v29_v13  ;;  %v32_v25 = vld [vmem:[#allocation2 + $0x38] sm:$0xff] }
   0xb   :  { %v47_v23 = vld [vmem:[#allocation2 + $0xb0] sm:$0xff]  ;;  %v48_v26 = vld [vmem:[#allocation2 + $0xb8] sm:$0xff]  ;;  %v62_v28 = vadd.f32 %v46_v19, %v30_v18  ;;  %v33_v29 = vld [vmem:[#allocation2 + $0x40] sm:$0xff] }
   0xc   :  { %v49_v30 = vld [vmem:[#allocation2 + $0xc0] sm:$0xff]  ;;  %v63_v34 = vadd.f32 %v47_v23, %v31_v22  ;;  %v34_v35 = vld [vmem:[#allocation2 + $0x48] sm:$0xff]  ;;  %v64_v38 = vadd.f32 %v48_v26, %v32_v25  ;;  %v35_v39 = vld [vmem:[#allocation2 + $0x50] sm:$0xff] }
   0xd   :  { %v137_v1 = vpop.eup %136  ;;  %v50_v36 = vld [vmem:[#allocation2 + $0xc8] sm:$0xff]  ;;  %v51_v40 = vld [vmem:[#allocation2 + $0xd0] sm:$0xff]  ;;  %v65_v42 = vadd.f32 %v49_v30, %v33_v29  ;;  %v36_v43 = vld [vmem:[#allocation2 + $0x58] sm:$0xff] }
   0xe   :  { %v74_v2 = vmul.f32 2.0, %v137_v1  ;;  %vm78_vm0 = vweird.f32 %v137_v1  ;;  %v52_v44 = vld [vmem:[#allocation2 + $0xd8] sm:$0xff]  ;;  %v66_v46 = vadd.f32 %v50_v36, %v34_v35  ;;  %v37_v47 = vld [vmem:[#allocation2 + $0x60] sm:$0xff]  ;;  %v67_v50 = vadd.f32 %v51_v40, %v35_v39  ;;  %v38_v51 = vld [vmem:[#allocation2 + $0x68] sm:$0xff] }
   0xf   :  { %v53_v48 = vld [vmem:[#allocation2 + $0xe0] sm:$0xff]  ;;  %v54_v52 = vld [vmem:[#allocation2 + $0xe8] sm:$0xff]  ;;  %v68_v54 = vadd.f32 %v52_v44, %v36_v43  ;;  %v39_v55 = vld [vmem:[#allocation2 + $0x70] sm:$0xff] }
  0x10   :  { %v75_v6 = vsub.f32 1.0, %v74_v2  ;;  %v55_v56 = vld [vmem:[#allocation2 + $0xf0] sm:$0xff]  ;;  %v69_v58 = vadd.f32 %v53_v48, %v37_v47  ;;  %v40_v59 = vld [vmem:[#allocation2 + $0x78] sm:$0xff]  ;;  %v70_v62 = vadd.f32 %v54_v52, %v38_v51 }
  0x11   :  { %v56_v60 = vld [vmem:[#allocation2 + $0xf8] sm:$0xff]  ;;  %v71_v0 = vadd.f32 %v55_v56, %v39_v55 }
  0x12   :  { %v76_v12 = vmul.f32 %v137_v1, %v75_v6  ;;  %v72_v2 = vadd.f32 %v56_v60, %v40_v59 }
  0x14   :  { %v77_v20 = vadd.f32 %v137_v1, %v76_v12 }
  0x16   :  { %v79_v27 = vsel %vm78_vm0, %v137_v1, %v77_v20 }
  0x17   :  { %v80_v31 = vmul.f32 %v79_v27, %v57_v15  ;;  %v81_v32 = vmul.f32 %v79_v27, %v58_v16  ;;  %v82_v33 = vmul.f32 %v79_v27, %v59_v17  ;;  %v83_v37 = vmul.f32 %v79_v27, %v60_v21 }
  0x18   :  { %v84_v41 = vmul.f32 %v79_v27, %v61_v24  ;;  %v85_v45 = vmul.f32 %v79_v27, %v62_v28  ;;  %v86_v49 = vmul.f32 %v79_v27, %v63_v34  ;;  %v87_v53 = vmul.f32 %v79_v27, %v64_v38 }
  0x19   :  { %96 = vst [vmem:[#allocation5] sm:$0xff] %v80_v31  ;;  %v88_v57 = vmul.f32 %v79_v27, %v65_v42  ;;  %v89_v61 = vmul.f32 %v79_v27, %v66_v46  ;;  %v90_v63 = vmul.f32 %v79_v27, %v67_v50  ;;  %v91_v1 = vmul.f32 %v79_v27, %v68_v54 }
  0x1a   :  { %97 = vst [vmem:[#allocation5 + $0x8] sm:$0xff] %v81_v32  ;;  %v92_v3 = vmul.f32 %v79_v27, %v69_v58  ;;  %v93_v4 = vmul.f32 %v79_v27, %v70_v62  ;;  %v94_v5 = vmul.f32 %v79_v27, %v71_v0  ;;  %v95_v6 = vmul.f32 %v79_v27, %v72_v2 }
  0x1b   :  { %98 = vst [vmem:[#allocation5 + $0x10] sm:$0xff] %v82_v33 }
  0x1c   :  { %99 = vst [vmem:[#allocation5 + $0x18] sm:$0xff] %v83_v37 }
  0x1d   :  { %100 = vst [vmem:[#allocation5 + $0x20] sm:$0xff] %v84_v41 }
  0x1e   :  { %101 = vst [vmem:[#allocation5 + $0x28] sm:$0xff] %v85_v45 }
  0x1f   :  { %102 = vst [vmem:[#allocation5 + $0x30] sm:$0xff] %v86_v49 }
  0x20   :  { %103 = vst [vmem:[#allocation5 + $0x38] sm:$0xff] %v87_v53 }
  0x21   :  { %104 = vst [vmem:[#allocation5 + $0x40] sm:$0xff] %v88_v57 }
  0x22   :  { %105 = vst [vmem:[#allocation5 + $0x48] sm:$0xff] %v89_v61 }
  0x23   :  { %106 = vst [vmem:[#allocation5 + $0x50] sm:$0xff] %v90_v63 }
  0x24   :  { %107 = vst [vmem:[#allocation5 + $0x58] sm:$0xff] %v91_v1 }
  0x25   :  { %108 = vst [vmem:[#allocation5 + $0x60] sm:$0xff] %v92_v3 }
  0x26   :  { %109 = vst [vmem:[#allocation5 + $0x68] sm:$0xff] %v93_v4 }
  0x27   :  { %110 = vst [vmem:[#allocation5 + $0x70] sm:$0xff] %v94_v5 }
  0x28   :  { %111 = vst [vmem:[#allocation5 + $0x78] sm:$0xff] %v95_v6 }
  0x29   :  { %124 = dma.vmem_to_hbm [thread:$0]  %s117_s13, 2048, %s119_s16, [#allocation4], %s191_s11, %s191_s11, %s192_s12  }
  0x2a   :  { %188 = dma.done.wait [#allocation4], 2048  }
  0x2b   :  { %189 = vsyncadd [#allocation4], 4294965248 }
  0x2c   :  { %129 = vsyncpa [#allocation3], 1 }
  0x2d   :  { %130 = vsyncpa [#allocation4], 1 }

</bundles_post_ra>
